<compile_context>
chip_gen: v6e
topology: v6e:2x2x1
jax: 0.10.0
libtpu: 0.0.40
codegen_flags: <defaults>
</compile_context>

<pallas_src>
import functools

import numpy as np

import jax
import jax.numpy as jnp
from jax import lax
from jax.experimental import pallas as pl
from jax.experimental.pallas import tpu as pltpu


# -----------------------------------------------------------------------------
# Hardware-aware knobs (safe fallbacks everywhere)
# -----------------------------------------------------------------------------
def _detect_vmem_limit():
    cap = 64 * 1024 * 1024
    try:
        cap = int(pltpu.get_tpu_info().vmem_capacity_bytes)
    except Exception:
        pass
    # 3/4 of physical, capped: ~48 MiB on v7x (64 MiB phys), 96 MiB on v5e/v6e.
    return max(32 * 1024 * 1024, min(3 * cap // 4, 96 * 1024 * 1024))


def _detect_multi_tensorcore():
    try:
        kind = jax.devices()[0].device_kind.lower()
    except Exception:
        return False
    return any(t in kind for t in ("v7", "v4", "v3", "v2")) or "v5p" in kind


_VMEM_LIMIT = _detect_vmem_limit()
_MULTI_TC = _detect_multi_tensorcore()
_VSPEC = pl.BlockSpec(memory_space=pltpu.MemorySpace.VMEM)


# -----------------------------------------------------------------------------
# Pallas kernels
# -----------------------------------------------------------------------------
def _mm_bn_act_kernel(*refs, relu, has_res):
    """o = act((x @ w) * scale + bias [+ residual]); accumulated over the K grid axis."""
    if has_res:
        x_ref, w_ref, s_ref, b_ref, r_ref, o_ref, acc_ref = refs
    else:
        x_ref, w_ref, s_ref, b_ref, o_ref, acc_ref = refs
        r_ref = None

    @pl.when(pl.program_id(2) == 0)
    def _init():
        acc_ref[...] = jnp.zeros_like(acc_ref)

    acc_ref[...] += jnp.dot(x_ref[...], w_ref[...],
                            preferred_element_type=jnp.float32)

    @pl.when(pl.program_id(2) == pl.num_programs(2) - 1)
    def _epilogue():
        y = acc_ref[...] * s_ref[...] + b_ref[...]          # f32 epilogue math
        if has_res:
            y = y + r_ref[...].astype(jnp.float32)
        if relu:
            y = jnp.maximum(y, 0.0)
        o_ref[...] = y.astype(o_ref.dtype)


def _bottleneck_fused_kernel(x_ref, m_ref, w1_ref, s1_ref, b1_ref,
                             w2_ref, s2_ref, b2_ref,
                             w3_ref, s3_ref, b3_ref, o_ref, *, W):
    """Whole stride-1 bottleneck (1x1 -> 3x3 pad1 -> 1x1 + residual, BN/ReLU fused),
    all intermediates VMEM-resident.  x_ref: (M, C) bf16 with C == 4*planes (packed)."""
    x = x_ref[...]                                              # (M, C) bf16
    M = x.shape[0]

    # conv1: 1x1 + BN + ReLU (kept in f32 for the shifted-slice stage below)
    h1 = jnp.dot(x, w1_ref[...], preferred_element_type=jnp.float32)
    h1 = jnp.maximum(h1 * s1_ref[...] + b1_ref[...], 0.0)       # (M, P) f32
    P = h1.shape[1]

    # conv2: 3x3 / pad 1 / stride 1 as 9 row-shifted GEMMs with precomputed
    # boundary masks (implicit GEMM -> no im2col replication, no HBM traffic).
    pad = W + 1
    zrows = jnp.zeros((pad, P), jnp.float32)
    h1p = jnp.concatenate([zrows, h1, zrows], axis=0)           # (M + 2*pad, P)
    acc = jnp.zeros((M, P), jnp.float32)
    for t in range(9):
        dy, dx = t // 3 - 1, t % 3 - 1
        off = dy * W + dx
        slab = h1p[pad + off: pad + off + M] * m_ref[t]         # mask == zero padding
        acc = acc + jnp.dot(slab.astype(jnp.bfloat16), w2_ref[t],
                            preferred_element_type=jnp.float32)
    h2 = jnp.maximum(acc * s2_ref[...] + b2_ref[...], 0.0).astype(jnp.bfloat16)

    # conv3: 1x1 + BN + residual add + ReLU
    out = jnp.dot(h2, w3_ref[...], preferred_element_type=jnp.float32)
    out = out * s3_ref[...] + b3_ref[...] + x.astype(jnp.float32)
    o_ref[...] = jnp.maximum(out, 0.0).astype(o_ref.dtype)


def _deconv_fused_kernel(x_ref, m_ref, w_ref, s_ref, b_ref, o_ref, *, W):
    """ConvTranspose2d(k=4, s=2, p=1) + BN + ReLU via its 4 sub-pixel phase convs,
    each phase a sum of 4 row-shifted GEMMs.  o_ref: (4, M, Co), one slab per phase."""
    x = x_ref[...].astype(jnp.float32)                          # (M, C)
    M, C = x.shape
    Co = o_ref.shape[2]
    pad = W + 1
    zrows = jnp.zeros((pad, C), jnp.float32)
    xp = jnp.concatenate([zrows, x, zrows], axis=0)
    s = s_ref[...]
    b = b_ref[...]
    for ph in range(4):
        py, px = ph // 2, ph % 2
        acc = jnp.zeros((M, Co), jnp.float32)
        for t in range(4):
            dy, dx = t // 2, t % 2
            off = (py + dy - 1) * W + (px + dx - 1)
            slab = xp[pad + off: pad + off + M] * m_ref[ph * 4 + t]
            acc = acc + jnp.dot(slab.astype(jnp.bfloat16), w_ref[ph * 4 + t],
                                preferred_element_type=jnp.float32)
        o_ref[ph] = jnp.maximum(acc * s + b, 0.0).astype(o_ref.dtype)


def _head_stats_kernel(p_ref, t_ref, sse_ref, max_ref, idx_ref):
    """One pass over (B*K, H*W) heatmaps: per-row squared-error sum, max, first argmax."""
    p = p_ref[...]
    d = p - t_ref[...]
    sse_ref[...] = jnp.sum(d * d, axis=1, keepdims=True)
    L = p.shape[1]
    mx = jnp.max(p, axis=1, keepdims=True)
    iota = lax.broadcasted_iota(jnp.int32, p.shape, 1)
    cand = jnp.where(p >= mx, iota, jnp.int32(L))
    idx_ref[...] = jnp.min(cand, axis=1, keepdims=True)        # first argmax (np.argmax)
    max_ref[...] = mx


# -----------------------------------------------------------------------------
# Tiling helpers + tiled GEMM wrapper (stem / downsample blocks / final conv)
# -----------------------------------------------------------------------------
def _round_up(v, m):
    return ((v + m - 1) // m) * m


def _pick_tm(M):
    m8 = _round_up(M, 8)
    if m8 <= 512:
        return m8, m8
    return _round_up(M, 512), 512


def _pick_tk(Kp):
    assert Kp % 128 == 0, f"packed K must be a multiple of 128, got {Kp}"
    if Kp <= 2048:
        return Kp
    for cand in range(2048, 0, -128):       # largest mult-of-128 divisor <= 2048
        if Kp % cand == 0:
            return cand
    return 128


def _pick_tiles(M, Kp, Np):
    Mp, TM = _pick_tm(M)
    TK = _pick_tk(Kp)
    TN = 256 if Np % 256 == 0 else 128
    # Only on multi-TensorCore chips: avoid a degenerate 1x1 (M, N) parallel grid
    # so both cores get work.  Single-TC chips (v5e/v6e) keep the wide tile.
    if _MULTI_TC and (Mp // TM) * (Np // TN) == 1:
        if TN == 256:
            TN = 128
        elif Mp >= 16 and (Mp // 2) % 8 == 0:
            TM = Mp // 2
    return Mp, TM, TK, TN


def _gemm_bn_act(x, w, scale, bias, residual=None, *, relu, n_out,
                 out_dtype=jnp.bfloat16):
    """x:(M,K) bf16-castable, w:(Kp,Np) pre-packed bf16, scale/bias:(1,Np) f32."""
    M, K = x.shape
    Kp, Np = w.shape
    Mp, TM, TK, TN = _pick_tiles(M, Kp, Np)

    xp = jnp.pad(x.astype(jnp.bfloat16), ((0, Mp - M), (0, Kp - K)))
    inputs = [xp, w, scale, bias]
    in_specs = [
        pl.BlockSpec((TM, TK), lambda i, j, k: (i, k)),
        pl.BlockSpec((TK, TN), lambda i, j, k: (k, j)),
        pl.BlockSpec((1, TN), lambda i, j, k: (0, j)),
        pl.BlockSpec((1, TN), lambda i, j, k: (0, j)),
    ]
    has_res = residual is not None
    if has_res:
        r = residual.astype(jnp.bfloat16)
        rp = jnp.pad(r, ((0, Mp - M), (0, Np - r.shape[1])))
        inputs.append(rp)
        in_specs.append(pl.BlockSpec((TM, TN), lambda i, j, k: (i, j)))

    out = pl.pallas_call(
        functools.partial(_mm_bn_act_kernel, relu=relu, has_res=has_res),
        out_shape=jax.ShapeDtypeStruct((Mp, Np), out_dtype),
        grid_spec=pltpu.PrefetchScalarGridSpec(
            num_scalar_prefetch=0,
            grid=(Mp // TM, Np // TN, Kp // TK),
            in_specs=in_specs,
            out_specs=pl.BlockSpec((TM, TN), lambda i, j, k: (i, j)),
            scratch_shapes=[pltpu.VMEM((TM, TN), jnp.float32)],
        ),
        compiler_params=pltpu.CompilerParams(
            dimension_semantics=("parallel", "parallel", "arbitrary"),
            vmem_limit_bytes=_VMEM_LIMIT),
    )(*inputs)
    return out[:M, :n_out]


# -----------------------------------------------------------------------------
# Conv / pooling building blocks (used by stem, downsample blocks, final conv)
# -----------------------------------------------------------------------------
def _im2col(x, kh, kw, stride, pad):
    # Explicit im2col in bf16 (XLA fuses the strided slices into the concat).
    # TODO(synk): implicit-GEMM (halo DMA) for these 4 strided 3x3 convs too.
    B, H, W, C = x.shape
    if pad > 0:
        x = jnp.pad(x, ((0, 0), (pad, pad), (pad, pad), (0, 0)))
    Ho = (H + 2 * pad - kh) // stride + 1
    Wo = (W + 2 * pad - kw) // stride + 1
    patches = [x[:, dy:dy + stride * Ho:stride, dx:dx + stride * Wo:stride, :]
               for dy in range(kh) for dx in range(kw)]
    return jnp.concatenate(patches, axis=-1), Ho, Wo


def conv2d_bn_act(x, p, *, kh, kw, cout, relu, stride=1, pad=0, residual=None,
                  out_dtype=jnp.bfloat16, keep_packed=False):
    """x NHWC; p = pre-packed {'w': (Kp,Np) bf16, 's','b': (1,Np) f32}."""
    B, H, W, C = x.shape
    x = x.astype(jnp.bfloat16)
    if kh == 1 and kw == 1:
        if stride > 1:
            x = x[:, ::stride, ::stride, :]
        Ho, Wo = x.shape[1], x.shape[2]
        cols = x.reshape(B * Ho * Wo, C)
    else:
        cols4, Ho, Wo = _im2col(x, kh, kw, stride, pad)
        cols = cols4.reshape(B * Ho * Wo, kh * kw * C)
    res2 = None if residual is None else residual.reshape(B * Ho * Wo, cout)
    n_keep = p['w'].shape[1] if keep_packed else cout
    y = _gemm_bn_act(cols, p['w'], p['s'], p['b'], res2,
                     relu=relu, n_out=n_keep, out_dtype=out_dtype)
    return y.reshape(B, Ho, Wo, n_keep)


def maxpool_3x3_s2_p1(x):
    # 9 strided slices + max; XLA fuses this, no stacked HBM copy.
    B, H, W, C = x.shape
    xp = jnp.pad(x, ((0, 0), (1, 1), (1, 1), (0, 0)), constant_values=-jnp.inf)
    Ho = (H + 2 - 3) // 2 + 1
    Wo = (W + 2 - 3) // 2 + 1
    out = None
    for dy in range(3):
        for dx in range(3):
            s = xp[:, dy:dy + 2 * Ho:2, dx:dx + 2 * Wo:2, :]
            out = s if out is None else jnp.maximum(out, s)
    return out


# -----------------------------------------------------------------------------
# Fused-kernel wrappers
# -----------------------------------------------------------------------------
def _tap_masks(B, H, W, offsets):
    """Per-tap row validity masks (T, B*H*W, 1) f32; compile-time constants."""
    yy, xx = np.meshgrid(np.arange(H), np.arange(W), indexing="ij")
    yy = np.broadcast_to(yy, (B, H, W)).reshape(-1)
    xx = np.broadcast_to(xx, (B, H, W)).reshape(-1)
    m = np.stack([((yy + dy >= 0) & (yy + dy < H) & (xx + dx >= 0) & (xx + dx < W))
                  for dy, dx in offsets], axis=0).astype(np.float32)
    return jnp.asarray(m[..., None])                        # (T, M, 1)


def _bottleneck_fused(x2d, p, masks, *, W):
    M, C = x2d.shape
    return pl.pallas_call(
        functools.partial(_bottleneck_fused_kernel, W=W),
        out_shape=jax.ShapeDtypeStruct((M, C), jnp.bfloat16),
        in_specs=[_VSPEC] * 11,
        out_specs=_VSPEC,
        compiler_params=pltpu.CompilerParams(vmem_limit_bytes=_VMEM_LIMIT),
    )(x2d, masks, p['w1'], p['s1'], p['b1'], p['w2'], p['s2'], p['b2'],
      p['w3'], p['s3'], p['b3'])


def _deconv_apply(p, x):
    """ConvTranspose2d(k=4,s=2,p=1)+BN+ReLU; one fused pallas_call for all 4 phases."""
    B, H, W, C = x.shape
    M = B * H * W
    Co = p['s'].shape[1]
    offs = [(py + dy - 1, px + dx - 1)
            for py in (0, 1) for px in (0, 1) for dy in (0, 1) for dx in (0, 1)]
    masks = _tap_masks(B, H, W, offs)
    ph = pl.pallas_call(
        functools.partial(_deconv_fused_kernel, W=W),
        out_shape=jax.ShapeDtypeStruct((4, M, Co), jnp.bfloat16),
        in_specs=[_VSPEC] * 5,
        out_specs=_VSPEC,
        compiler_params=pltpu.CompilerParams(vmem_limit_bytes=_VMEM_LIMIT),
    )(x.reshape(M, C).astype(jnp.bfloat16), masks, p['w'], p['s'], p['b'])
    ph = ph.reshape(2, 2, B, H, W, Co)
    # out[b, 2h+py, 2w+px] = phase[py, px][b, h, w]
    return jnp.transpose(ph, (2, 3, 0, 4, 1, 5)).reshape(B, 2 * H, 2 * W, Co)


# -----------------------------------------------------------------------------
# Deterministic synthetic parameter init (ResNet-101 + DREAM upsample head)
# -----------------------------------------------------------------------------
def _conv_w(key, kh, kw, cin, cout, gain=1.0):
    std = gain * (2.0 / (kh * kw * cin)) ** 0.5
    return std * jax.random.normal(key, (kh, kw, cin, cout), jnp.float32)


def _folded_bn(key, c, eps=1e-5):
    # Inference-mode BatchNorm folded into per-channel scale/bias.
    # TODO(synk): train-mode BN (batch statistics) not implemented; running stats used.
    k1, k2, k3, k4 = jax.random.split(key, 4)
    gamma = 1.0 + 0.05 * jax.random.normal(k1, (c,), jnp.float32)
    beta = 0.05 * jax.random.normal(k2, (c,), jnp.float32)
    rmean = 0.05 * jax.random.normal(k3, (c,), jnp.float32)
    rvar = 1.0 + 0.05 * jnp.abs(jax.random.normal(k4, (c,), jnp.float32))
    scale = gamma / jnp.sqrt(rvar + eps)
    bias = beta - rmean * scale
    return scale, bias


def _pack_w(w2d):
    K, N = w2d.shape
    Kp, Np = _round_up(K, 128), _round_up(N, 128)
    return jnp.pad(w2d, ((0, Kp - K), (0, Np - N))).astype(jnp.bfloat16)


def _pack_vec(v):
    N = v.shape[0]
    Np = _round_up(N, 128)
    return jnp.pad(v.astype(jnp.float32), (0, Np - N)).reshape(1, Np)


def _pack_conv(w_hwio, scale, bias):
    kh, kw, cin, cout = w_hwio.shape
    return {'w': _pack_w(w_hwio.reshape(kh * kw * cin, cout)),
            's': _pack_vec(scale), 'b': _pack_vec(bias)}


class _KeyGen:
    def __init__(self, key):
        self._key, self._i = key, 0

    def __call__(self):
        self._i += 1
        return jax.random.fold_in(self._key, self._i)


def _init_bottleneck_first(kg, cin, planes):
    return {'c1': _pack_conv(_conv_w(kg(), 1, 1, cin, planes),
                             *_folded_bn(kg(), planes)),
            'c2': _pack_conv(_conv_w(kg(), 3, 3, planes, planes),
                             *_folded_bn(kg(), planes)),
            'c3': _pack_conv(_conv_w(kg(), 1, 1, planes, planes * 4, gain=0.1),
                             *_folded_bn(kg(), planes * 4)),
            'ds': _pack_conv(_conv_w(kg(), 1, 1, cin, planes * 4),
                             *_folded_bn(kg(), planes * 4))}


def _init_bottleneck_tail(kg, planes):
    """Stride-1, no-downsample bottleneck packed for the fused kernel."""
    cin = planes * 4
    Pp = _round_up(planes, 128)
    w1 = _conv_w(kg(), 1, 1, cin, planes)
    s1, b1 = _folded_bn(kg(), planes)
    w2 = _conv_w(kg(), 3, 3, planes, planes)
    s2, b2 = _folded_bn(kg(), planes)
    w3 = _conv_w(kg(), 1, 1, planes, cin, gain=0.1)   # keeps untrained residual tame
    s3, b3 = _folded_bn(kg(), cin)
    w1p = jnp.pad(w1.reshape(cin, planes),
                  ((0, 0), (0, Pp - planes))).astype(jnp.bfloat16)
    w2p = jnp.pad(w2.reshape(9, planes, planes),
                  ((0, 0), (0, Pp - planes), (0, Pp - planes))).astype(jnp.bfloat16)
    w3p = jnp.pad(w3.reshape(planes, cin),
                  ((0, Pp - planes), (0, 0))).astype(jnp.bfloat16)
    return {'w1': w1p, 's1': _pack_vec(s1), 'b1': _pack_vec(b1),
            'w2': w2p, 's2': _pack_vec(s2), 'b2': _pack_vec(b2),
            'w3': w3p, 's3': _pack_vec(s3), 'b3': _pack_vec(b3)}


def _stack_blocks(blocks):
    return jax.tree_util.tree_map(lambda *xs: jnp.stack(xs, axis=0), *blocks)


def init_resnet_simple(key, n_keypoints=7):
    # TODO(synk): torchvision pretrained=True weights cannot be loaded; synthetic init.
    kg = _KeyGen(key)
    params = {'conv1': _pack_conv(_conv_w(kg(), 7, 7, 3, 64),
                                  *_folded_bn(kg(), 64))}

    def make_layer(cin, planes, blocks):
        first = _init_bottleneck_first(kg, cin, planes)
        tails = [_init_bottleneck_tail(kg, planes) for _ in range(blocks - 1)]
        return {'first': first, 'tail': _stack_blocks(tails)}

    # resnet101 block counts: [3, 4, 23, 3]
    params['layer1'] = make_layer(64, 64, 3)
    params['layer2'] = make_layer(256, 128, 4)
    params['layer3'] = make_layer(512, 256, 23)
    params['layer4'] = make_layer(1024, 512, 3)

    # upsample head: 4 x (ConvTranspose2d(k4,s2,p1)+BN+ReLU), then Conv2d(256, K, 1).
    # Each deconv stored as 16 phase/tap GEMM weights: tap (dy,dx) of phase (py,px)
    # uses kernel index ky = 3-py-2dy, kx = 3-px-2dx (derived from oy = 2*iy - 1 + ky).
    deconvs, cin = [], 2048
    for _ in range(4):
        dw = _conv_w(kg(), 4, 4, cin, 256)                 # Wt[ky, kx, ci, co]
        conv_bias = 0.05 * jax.random.normal(kg(), (256,), jnp.float32)
        s, bn_b = _folded_bn(kg(), 256)
        b = s * conv_bias + bn_b                           # fold conv bias into BN bias
        taps = []
        for py in (0, 1):
            for px in (0, 1):
                for dy in (0, 1):
                    for dx in (0, 1):
                        taps.append(dw[3 - py - 2 * dy, 3 - px - 2 * dx])
        deconvs.append({'w': jnp.stack(taps, axis=0).astype(jnp.bfloat16),
                        's': _pack_vec(s), 'b': _pack_vec(b)})
        cin = 256
    params['upsample'] = deconvs

    fw = _conv_w(kg(), 1, 1, 256, n_keypoints)
    fb = 0.05 * jax.random.normal(kg(), (n_keypoints,), jnp.float32)
    params['final'] = {'w': _pack_w(fw.reshape(256, n_keypoints)),
                       's': _pack_vec(jnp.ones((n_keypoints,), jnp.float32)),
                       'b': _pack_vec(fb)}
    return params


# -----------------------------------------------------------------------------
# Forward passes
# -----------------------------------------------------------------------------
@jax.jit
def _stem_jit(p_conv1, x_nchw):
    # bf16 BEFORE the layout transpose (half the HBM bytes moved).
    x = jnp.transpose(x_nchw.astype(jnp.bfloat16), (0, 2, 3, 1))    # NCHW -> NHWC
    # Keep the stem output in packed 128-channel form (upper channels are exact
    # zeros); layer1's 1x1 convs consume it without a slice/re-pad round trip.
    x = conv2d_bn_act(x, p_conv1, kh=7, kw=7, cout=64, relu=True, stride=2, pad=3,
                      keep_packed=True)
    return maxpool_3x3_s2_p1(x)


@functools.partial(jax.jit, static_argnames=("planes", "stride"))
def _layer_jit(p, x, *, planes, stride):
    # First (downsample) block: tiled-GEMM path with residual fused in c3 epilogue.
    f = p['first']
    out = conv2d_bn_act(x, f['c1'], kh=1, kw=1, cout=planes, relu=True)
    out = conv2d_bn_act(out, f['c2'], kh=3, kw=3, cout=planes, relu=True,
                        stride=stride, pad=1)
    identity = conv2d_bn_act(x, f['ds'], kh=1, kw=1, cout=4 * planes,
                             relu=False, stride=stride)
    x = conv2d_bn_act(out, f['c3'], kh=1, kw=1, cout=4 * planes, relu=True,
                      residual=identity)

    # Remaining blocks: ONE fused pallas_call per block; activations stay flat
    # (M, C) bf16 between blocks (no HBM intermediates inside a block), and all
    # identical blocks share a single compiled kernel via lax.scan.
    B, H, W, C = x.shape
    masks = _tap_masks(B, H, W, [(dy, dx) for dy in (-1, 0, 1) for dx in (-1, 0, 1)])
    x2d = x.reshape(B * H * W, C)

    def body(carry, blk):
        return _bottleneck_fused(carry, blk, masks, W=W), None

    x2d, _ = lax.scan(body, x2d, p['tail'])
    return x2d.reshape(B, H, W, C)


@jax.jit
def _upsample_jit(deconvs, x):
    for p in deconvs:
        x = _deconv_apply(p, x)
    return x


@jax.jit
def _head_jit(p_final, feats, belief_maps):
    n_kp = belief_maps.shape[1]
    y = conv2d_bn_act(feats, p_final, kh=1, kw=1, cout=n_kp, relu=False,
                      out_dtype=jnp.float32)
    heat = jnp.transpose(y, (0, 3, 1, 2))                   # NHWC -> NCHW
    B, K, Hh, Wh = heat.shape

    # Single lane-dense pass: MSE row sums + per-map max + first argmax.
    p2 = heat.reshape(B * K, Hh * Wh)
    t2 = belief_maps.reshape(B * K, Hh * Wh).astype(jnp.float32)
    sse, maxvals, idx = pl.pallas_call(
        _head_stats_kernel,
        out_shape=(jax.ShapeDtypeStruct((B * K, 1), jnp.float32),
                   jax.ShapeDtypeStruct((B * K, 1), jnp.float32),
                   jax.ShapeDtypeStruct((B * K, 1), jnp.int32)),
        in_specs=[_VSPEC, _VSPEC],
        out_specs=(_VSPEC, _VSPEC, _VSPEC),
        compiler_params=pltpu.CompilerParams(vmem_limit_bytes=_VMEM_LIMIT),
    )(p2, t2)
    loss = jnp.sum(sse) / heat.size                          # MSELoss reduction='mean'

    maxvals = maxvals.reshape(B, K, 1)
    idxf = idx.astype(jnp.float32).reshape(B, K, 1)
    preds = jnp.concatenate([jnp.mod(idxf, Wh), jnp.floor(idxf / Wh)], axis=2)
    pred_mask = (maxvals > 0.0).astype(jnp.float32)
    pts2d = preds * pred_mask
    pts2d = jnp.where(pts2d < 0.0001, -999.999, pts2d)
    # TODO(synk): dream_image_proc.convert_keypoints_to_netin_from_netout /
    # convert_keypoints_to_raw_from_netin not provided; reproduced as plain
    # per-axis resolution rescaling ('resize' preprocessing).
    net_out, net_in, raw = (208.0, 208.0), (400.0, 400.0), (1280.0, 720.0)
    scale = jnp.array([(net_in[0] / net_out[0]) * (raw[0] / net_in[0]),
                       (net_in[1] / net_out[1]) * (raw[1] / net_in[1])],
                      jnp.float32)
    return heat, loss, pts2d * scale, maxvals


_LAYER_CFG = (("layer1", 64, 1), ("layer2", 128, 2),
              ("layer3", 256, 2), ("layer4", 512, 2))


def _backbone_forward(params, image_nchw):
    x = _stem_jit(params['conv1'], image_nchw)
    for name, planes, stride in _LAYER_CFG:
        x = _layer_jit(params[name], x, planes=planes, stride=stride)
    return _upsample_jit(params['upsample'], x)


def dream_network_forward(params, dps, training=False):
    image_rgb_input = dps['image_rgb_input']               # (B, 3, H, W) NCHW
    target = dps['belief_maps']                            # (B, K, H/2, W/2)
    feats = _backbone_forward(params, image_rgb_input)
    heat, loss, kpts_all, _conf = _head_jit(params['final'], feats, target)
    loss_dict = {'belief_map_loss': loss}

    if training:
        return {'network_output_heads': [heat]}, loss_dict

    # eval path: cfg.old_process=False branch (hrnet_get_max_preds semantics).
    # TODO(synk): cfg.old_process=True (dream_image_proc.peaks_from_belief_maps)
    # and the cfg.dbg cv2/matplotlib visualization have no Pallas equivalent.
    kpts_det = [kpts_all[b] for b in range(kpts_all.shape[0])]
    return {'detected_kps': kpts_det}, loss_dict


# -----------------------------------------------------------------------------
if __name__ == "__main__":
    key = jax.random.PRNGKey(0)
    k_params, k_img, k_map = jax.random.split(key, 3)

    B, H, W = 2, 64, 64
    n_keypoints = 7
    params = init_resnet_simple(k_params, n_keypoints=n_keypoints)

    image_rgb_input = jax.random.normal(k_img, (B, 3, H, W), jnp.float32)
    belief_maps = jax.random.uniform(k_map, (B, n_keypoints, H // 2, W // 2),
                                     dtype=jnp.float32)
    dps = {'image_rgb_input': image_rgb_input, 'belief_maps': belief_maps}

    outputs, loss_dict = dream_network_forward(params, dps, training=False)
    jax.block_until_ready(loss_dict['belief_map_loss'])
    jax.block_until_ready(outputs['detected_kps'])
    print("KERNEL_OK")
</pallas_src>

<mosaic_0001>
module attributes {stable_mosaic.version = 11 : i64} {
  func.func @_mm_bn_act_kernel(%arg0: i32, %arg1: i32, %arg2: i32, %arg3: memref<512x256xbf16, #tpu.memory_space<vmem>>, %arg4: memref<256x128xbf16, #tpu.memory_space<vmem>>, %arg5: memref<1x128xf32, #tpu.memory_space<vmem>>, %arg6: memref<1x128xf32, #tpu.memory_space<vmem>>, %arg7: memref<512x128xbf16, #tpu.memory_space<vmem>>, %arg8: memref<512x128xf32, #tpu.memory_space<vmem>>) attributes {dimension_semantics = [#tpu.dimension_semantics<parallel>, #tpu.dimension_semantics<parallel>, #tpu.dimension_semantics<arbitrary>], iteration_bounds = array<i64: 4, 1, 1>, scalar_prefetch = 0 : i64, scratch_operands = 1 : i64, tpu.core_type = #tpu.core_type<tc>, window_params = [{transform_indices = @transform_0, window_bounds = array<i64: 512, 256>}, {transform_indices = @transform_1, window_bounds = array<i64: 256, 128>}, {transform_indices = @transform_2, window_bounds = array<i64: 1, 128>}, {transform_indices = @transform_3, window_bounds = array<i64: 1, 128>}, {transform_indices = @transform_4, window_bounds = array<i64: 512, 128>}]} {
    %c0_i32 = arith.constant 0 : i32
    %0 = arith.cmpi eq, %arg2, %c0_i32 : i32
    %1 = arith.extui %0 : i1 to i32
    %c0_i32_0 = arith.constant 0 : i32
    %2 = arith.cmpi ne, %1, %c0_i32_0 : i32
    scf.if %2 {
      %cst_10 = arith.constant 0.000000e+00 : f32
      %12 = vector.broadcast %cst_10 : f32 to vector<512x128xf32>
      %c0_11 = arith.constant 0 : index
      %c0_12 = arith.constant 0 : index
      %13 = vector.load %arg8[%c0_11, %c0_12] : memref<512x128xf32, #tpu.memory_space<vmem>>, vector<512x128xf32>
      tpu.vector_store %arg8[%c0_11, %c0_12], %12 {strides = array<i32>} : memref<512x128xf32, #tpu.memory_space<vmem>>, vector<512x128xf32>,
    } else {
    }
    %c0 = arith.constant 0 : index
    %c0_1 = arith.constant 0 : index
    %3 = vector.load %arg8[%c0, %c0_1] : memref<512x128xf32, #tpu.memory_space<vmem>>, vector<512x128xf32>
    %c0_2 = arith.constant 0 : index
    %c0_3 = arith.constant 0 : index
    %4 = vector.load %arg3[%c0_2, %c0_3] : memref<512x256xbf16, #tpu.memory_space<vmem>>, vector<512x256xbf16>
    %c0_4 = arith.constant 0 : index
    %c0_5 = arith.constant 0 : index
    %5 = vector.load %arg4[%c0_4, %c0_5] : memref<256x128xbf16, #tpu.memory_space<vmem>>, vector<256x128xbf16>
    %cst = arith.constant dense<0.000000e+00> : vector<512x128xf32>
    %6 = tpu.matmul %4, %5, %cst {dimension_numbers = #tpu.dot_dimension_numbers<[1], [0], [0], [1], [0, 0, 1, 1], [], []>} : vector<512x256xbf16>, vector<256x128xbf16>, vector<512x128xf32> -> vector<512x128xf32>
    %7 = arith.addf %3, %6 : vector<512x128xf32>
    %c0_6 = arith.constant 0 : index
    %c0_7 = arith.constant 0 : index
    %8 = vector.load %arg8[%c0_6, %c0_7] : memref<512x128xf32, #tpu.memory_space<vmem>>, vector<512x128xf32>
    tpu.vector_store %arg8[%c0_6, %c0_7], %7 {strides = array<i32>} : memref<512x128xf32, #tpu.memory_space<vmem>>, vector<512x128xf32>,
    %c0_i32_8 = arith.constant 0 : i32
    %9 = arith.cmpi eq, %arg2, %c0_i32_8 : i32
    %10 = arith.extui %9 : i1 to i32
    %c0_i32_9 = arith.constant 0 : i32
    %11 = arith.cmpi ne, %10, %c0_i32_9 : i32
    scf.if %11 {
      %c0_10 = arith.constant 0 : index
      %c0_11 = arith.constant 0 : index
      %12 = vector.load %arg8[%c0_10, %c0_11] : memref<512x128xf32, #tpu.memory_space<vmem>>, vector<512x128xf32>
      %c0_12 = arith.constant 0 : index
      %c0_13 = arith.constant 0 : index
      %13 = vector.load %arg5[%c0_12, %c0_13] : memref<1x128xf32, #tpu.memory_space<vmem>>, vector<1x128xf32>
      %14 = vector.broadcast %13 : vector<1x128xf32> to vector<512x128xf32>
      %15 = arith.mulf %12, %14 : vector<512x128xf32>
      %c0_14 = arith.constant 0 : index
      %c0_15 = arith.constant 0 : index
      %16 = vector.load %arg6[%c0_14, %c0_15] : memref<1x128xf32, #tpu.memory_space<vmem>>, vector<1x128xf32>
      %17 = vector.broadcast %16 : vector<1x128xf32> to vector<512x128xf32>
      %18 = arith.addf %15, %17 : vector<512x128xf32>
      %cst_16 = arith.constant 0.000000e+00 : f32
      %19 = vector.broadcast %cst_16 : f32 to vector<512x128xf32>
      %20 = arith.maximumf %18, %19 : vector<512x128xf32>
      %21 = arith.truncf %20 : vector<512x128xf32> to vector<512x128xbf16>
      %c0_17 = arith.constant 0 : index
      %c0_18 = arith.constant 0 : index
      %22 = vector.load %arg7[%c0_17, %c0_18] : memref<512x128xbf16, #tpu.memory_space<vmem>>, vector<512x128xbf16>
      tpu.vector_store %arg7[%c0_17, %c0_18], %21 {strides = array<i32>} : memref<512x128xbf16, #tpu.memory_space<vmem>>, vector<512x128xbf16>,
    } else {
    }
    return
  }
  func.func @transform_0(%arg0: i32, %arg1: i32, %arg2: i32) -> (i32, i32) {
    %c0_i32 = arith.constant 0 : i32
    return %arg0, %arg2 : i32, i32
  }
  func.func @transform_1(%arg0: i32, %arg1: i32, %arg2: i32) -> (i32, i32) {
    %c0_i32 = arith.constant 0 : i32
    return %arg2, %arg1 : i32, i32
  }
  func.func @transform_2(%arg0: i32, %arg1: i32, %arg2: i32) -> (i32, i32) {
    %c0_i32 = arith.constant 0 : i32
    %c0_i32_0 = arith.constant 0 : i32
    return %c0_i32, %arg1 : i32, i32
  }
  func.func @transform_3(%arg0: i32, %arg1: i32, %arg2: i32) -> (i32, i32) {
    %c0_i32 = arith.constant 0 : i32
    %c0_i32_0 = arith.constant 0 : i32
    return %c0_i32, %arg1 : i32, i32
  }
  func.func @transform_4(%arg0: i32, %arg1: i32, %arg2: i32) -> (i32, i32) {
    %c0_i32 = arith.constant 0 : i32
    return %arg0, %arg1 : i32, i32
  }
}

</mosaic_0001>

<bundles_post_ra>
// kernel: _stem_jit.1
= control target key start
LH: loop header
LB: loop body
LE: loop exit
PB: predicated region body
PF: predicated region fallthrough
CT: control target
= control target key end

     0   :  { %s2725_s15 = smov 0   ;;  %s2727_s16 = smov 0   ;;  %s3080_s0 = inlined_call_operand.vmem [shape: bf16[2048,256], index: 0, kind: input, shape index: {}]   ;;  %s3081_s1 = inlined_call_operand.vmem [shape: bf16[256,128], index: 1, kind: input, shape index: {}]   ;;  %s3082_s2 = inlined_call_operand.vmem [shape: f32[1,128], index: 2, kind: input, shape index: {}]   ;;  %s3083_s3 = inlined_call_operand.vmem [shape: f32[1,128], index: 3, kind: input, shape index: {}]   ;;  %s3084_s4 = inlined_call_operand.vmem [shape: bf16[2048,128], index: 4, kind: output, shape index: {}]  }
   0x1   :  { %s2729_s17 = smov 0  }
   0x2 LB: > { %s33_s18 = sadd.s32 1, %s2693_s16  ;;  %p2096_p0 = scmp.ge.s32.totalorder %s2697_s17, 1  ;;  %s2697_s17 = sphi %s2729_s17, %s14_s17   ;;  %s2693_s16 = sphi %s2727_s16, %s3086_s16   ;;  %s2689_s15 = sphi %s2725_s15, %s3085_s15  }
   0x3   : > { %p35_p1 = scmp.ge.s32.totalorder %s33_s18, 4  ;;  %p224_p2 = scmp.lt.s32.totalorder %s2697_s17, 5 }
   0x5   : > { %s3088_s18 = smov (%p35_p1, %s33_s18), 0  ;;  %p225_p3 = pnand %p2096_p0, %p224_p2 }
   0x6   : > { %s2097_s21 = sshll.u32 (!%p225_p3), %s2689_s15, 6 }
   0x7   : > { %228 = sbr.rel (%p225_p3) target bundleno = 403 (0x193), region = 36  ;;  %p274_p4 = scmp.lt.s32.totalorder (!%p225_p3), %s2097_s21, 255 }
   0xc   : > { %v2563_v0 = vld [vmem:[%s3081_s1 + $0x38] sm:$0xff]   ;;  %v2699_v1 = vmov 0   ;;  %v2564_v2 = vld [vmem:[%s3081_s1 + $0x30] sm:$0xff]   ;;  %v2565_v3 = vld [vmem:[%s3081_s1 + $0x28] sm:$0xff]   ;;  %s3090_s21 = smov (!%p274_p4, %s2097_s21), 255 }
   0xd   : > { %953 = vmatprep.subr.bf16.mxu0 %v2699_v1  ;;  %2506 = vmatprep.subr.bf16.mxu1 %v2699_v1  ;;  %v2566_v4 = vld [vmem:[%s3081_s1 + $0x20] sm:$0xff]   ;;  %s2250_s28 = sshll.u32 %s3090_s21, 3  ;;  %v2567_v5 = vld [vmem:[%s3081_s1 + $0x18] sm:$0xff]   ;;  %v2568_v7 = vld [vmem:[%s3081_s1 + $0x10] sm:$0xff]  }
   0xe   : > { %954 = vmatpush1.bf16.msra.mxu0 %v2563_v0  ;;  %2522 = vmatpush1.bf16.msra.mxu1 %v2563_v0  ;;  %s2772_s7 = scalar_lea.vmem %s3080_s0, %s2250_s28  ;;  %v2569_v9 = vld [vmem:[%s3081_s1 + $0x8] sm:$0xff]   ;;  %v2570_v10 = vld [vmem:[%s3081_s1] sm:$0xff]   ;;  %v2571_v11 = vld [vmem:[%s3081_s1 + $0x78] sm:$0xff]  }
   0xf   : > { %955 = vmatprep.subr.bf16.mxu0 %v2699_v1  ;;  %2507 = vmatprep.subr.bf16.mxu1 %v2699_v1  ;;  %v2581_v6 = vld [vmem:[%s2772_s7 + $0x4] ss:$8 sps:$4 sm:$0xff]   ;;  %v2572_v12 = vld [vmem:[%s3081_s1 + $0x70] sm:$0xff]   ;;  %v2575_v15 = vld [vmem:[%s3081_s1 + $0x58] sm:$0xff]  }
  0x10   : > { %v2584_v8 = vld [vmem:[%s2772_s7 + $0x104] ss:$8 sps:$4 sm:$0xff]   ;;  %985 = vmatprep.mubr.bf16.mxu0 %v2581_v6  ;;  %v2576_v16 = vld [vmem:[%s3081_s1 + $0x50] sm:$0xff]   ;;  %v2579_v19 = vld [vmem:[%s2772_s7] ss:$8 sps:$4 sm:$0xff]  }
  0x11   : > { %1113 = vmatprep.mubr.bf16.mxu1 %v2584_v8  ;;  %v2573_v13 = vld [vmem:[%s3081_s1 + $0x68] sm:$0xff]   ;;  %v2574_v14 = vld [vmem:[%s3081_s1 + $0x60] sm:$0xff]   ;;  %v2585_v21 = vld [vmem:[%s2772_s7 + $0x14] ss:$8 sps:$4 sm:$0xff]  }
  0x12   : > { %956 = vmatpush1.bf16.msra.mxu0 %v2564_v2  ;;  %2523 = vmatpush1.bf16.msra.mxu1 %v2564_v2  ;;  %v2577_v17 = vld [vmem:[%s3081_s1 + $0x48] sm:$0xff]   ;;  %v2578_v18 = vld [vmem:[%s3081_s1 + $0x40] sm:$0xff]   ;;  %v2587_v22 = vld [vmem:[%s2772_s7 + $0x114] ss:$8 sps:$4 sm:$0xff]  }
  0x13   : > { %957 = vmatprep.subr.bf16.mxu0 %v2699_v1  ;;  %2508 = vmatprep.subr.bf16.mxu1 %v2699_v1  ;;  %v2582_v20 = vld [vmem:[%s2772_s7 + $0x100] ss:$8 sps:$4 sm:$0xff]   ;;  %v2589_v23 = vld [vmem:[%s2772_s7 + $0x10] ss:$8 sps:$4 sm:$0xff]   ;;  %v2591_v25 = vld [vmem:[%s2772_s7 + $0x24] ss:$8 sps:$4 sm:$0xff]  }
  0x14   : > { %v2590_v24 = vld [vmem:[%s2772_s7 + $0x110] ss:$8 sps:$4 sm:$0xff]   ;;  %v2593_v26 = vld [vmem:[%s2772_s7 + $0x124] ss:$8 sps:$4 sm:$0xff]   ;;  %v2595_v27 = vld [vmem:[%s2772_s7 + $0x20] ss:$8 sps:$4 sm:$0xff]  }
  0x15   : > { %v2596_v28 = vld [vmem:[%s2772_s7 + $0x120] ss:$8 sps:$4 sm:$0xff]   ;;  %v2597_v29 = vld [vmem:[%s2772_s7 + $0x34] ss:$8 sps:$4 sm:$0xff]   ;;  %v2601_v31 = vld [vmem:[%s2772_s7 + $0x30] ss:$8 sps:$4 sm:$0xff]  }
  0x16   : > { %958 = vmatpush1.bf16.msra.mxu0 %v2565_v3  ;;  %2524 = vmatpush1.bf16.msra.mxu1 %v2565_v3  ;;  %v2599_v30 = vld [vmem:[%s2772_s7 + $0x134] ss:$8 sps:$4 sm:$0xff]   ;;  %v2602_v32 = vld [vmem:[%s2772_s7 + $0x130] ss:$8 sps:$4 sm:$0xff]   ;;  %v2603_v33 = vld [vmem:[%s2772_s7 + $0x44] ss:$8 sps:$4 sm:$0xff]  }
  0x17   : > { %959 = vmatprep.subr.bf16.mxu0 %v2699_v1  ;;  %2509 = vmatprep.subr.bf16.mxu1 %v2699_v1  ;;  %v2605_v34 = vld [vmem:[%s2772_s7 + $0x144] ss:$8 sps:$4 sm:$0xff]   ;;  %v2607_v35 = vld [vmem:[%s2772_s7 + $0x40] ss:$8 sps:$4 sm:$0xff]   ;;  %v2609_v37 = vld [vmem:[%s2772_s7 + $0x54] ss:$8 sps:$4 sm:$0xff]  }
  0x18   : > { %v2608_v36 = vld [vmem:[%s2772_s7 + $0x140] ss:$8 sps:$4 sm:$0xff]   ;;  %v2611_v38 = vld [vmem:[%s2772_s7 + $0x154] ss:$8 sps:$4 sm:$0xff]   ;;  %v2613_v39 = vld [vmem:[%s2772_s7 + $0x50] ss:$8 sps:$4 sm:$0xff]  }
  0x19   : > { %v2614_v40 = vld [vmem:[%s2772_s7 + $0x150] ss:$8 sps:$4 sm:$0xff]   ;;  %v2615_v41 = vld [vmem:[%s2772_s7 + $0x64] ss:$8 sps:$4 sm:$0xff]   ;;  %v2619_v43 = vld [vmem:[%s2772_s7 + $0x60] ss:$8 sps:$4 sm:$0xff]  }
  0x1a   : > { %960 = vmatpush1.bf16.msra.mxu0 %v2566_v4  ;;  %2525 = vmatpush1.bf16.msra.mxu1 %v2566_v4  ;;  %v2617_v42 = vld [vmem:[%s2772_s7 + $0x164] ss:$8 sps:$4 sm:$0xff]   ;;  %v2620_v44 = vld [vmem:[%s2772_s7 + $0x160] ss:$8 sps:$4 sm:$0xff]   ;;  %v2621_v45 = vld [vmem:[%s2772_s7 + $0x74] ss:$8 sps:$4 sm:$0xff]  }
  0x1b   : > { %961 = vmatprep.subr.bf16.mxu0 %v2699_v1  ;;  %2510 = vmatprep.subr.bf16.mxu1 %v2699_v1  ;;  %v2623_v46 = vld [vmem:[%s2772_s7 + $0x174] ss:$8 sps:$4 sm:$0xff]   ;;  %v2625_v47 = vld [vmem:[%s2772_s7 + $0x70] ss:$8 sps:$4 sm:$0xff]   ;;  %v2627_v49 = vld [vmem:[%s2772_s7 + $0x84] ss:$8 sps:$4 sm:$0xff]  }
  0x1c   : > { %v2626_v48 = vld [vmem:[%s2772_s7 + $0x170] ss:$8 sps:$4 sm:$0xff]   ;;  %v2629_v50 = vld [vmem:[%s2772_s7 + $0x184] ss:$8 sps:$4 sm:$0xff]   ;;  %v2631_v51 = vld [vmem:[%s2772_s7 + $0x80] ss:$8 sps:$4 sm:$0xff]  }
  0x1d   : > { %v2632_v52 = vld [vmem:[%s2772_s7 + $0x180] ss:$8 sps:$4 sm:$0xff]   ;;  %v2633_v53 = vld [vmem:[%s2772_s7 + $0x94] ss:$8 sps:$4 sm:$0xff]   ;;  %v2637_v55 = vld [vmem:[%s2772_s7 + $0x90] ss:$8 sps:$4 sm:$0xff]  }
  0x1e   : > { %962 = vmatpush1.bf16.msra.mxu0 %v2567_v5  ;;  %2526 = vmatpush1.bf16.msra.mxu1 %v2567_v5  ;;  %v2635_v54 = vld [vmem:[%s2772_s7 + $0x194] ss:$8 sps:$4 sm:$0xff]   ;;  %v2638_v56 = vld [vmem:[%s2772_s7 + $0x190] ss:$8 sps:$4 sm:$0xff]   ;;  %v2639_v57 = vld [vmem:[%s2772_s7 + $0xa4] ss:$8 sps:$4 sm:$0xff]  }
  0x1f   : > { %963 = vmatprep.subr.bf16.mxu0 %v2699_v1  ;;  %2511 = vmatprep.subr.bf16.mxu1 %v2699_v1  ;;  %v2641_v58 = vld [vmem:[%s2772_s7 + $0x1a4] ss:$8 sps:$4 sm:$0xff]   ;;  %v2643_v59 = vld [vmem:[%s2772_s7 + $0xa0] ss:$8 sps:$4 sm:$0xff]   ;;  %v2645_v61 = vld [vmem:[%s2772_s7 + $0xb4] ss:$8 sps:$4 sm:$0xff]  }
  0x20   : > { %v2644_v60 = vld [vmem:[%s2772_s7 + $0x1a0] ss:$8 sps:$4 sm:$0xff]   ;;  %v2647_v62 = vld [vmem:[%s2772_s7 + $0x1b4] ss:$8 sps:$4 sm:$0xff]   ;;  %v2649_v63 = vld [vmem:[%s2772_s7 + $0xb0] ss:$8 sps:$4 sm:$0xff]  }
  0x21   : > { %v2650_v0 = vld [vmem:[%s2772_s7 + $0x1b0] ss:$8 sps:$4 sm:$0xff]   ;;  %v2653_v2 = vld [vmem:[%s2772_s7 + $0x1c4] ss:$8 sps:$4 sm:$0xff]   ;;  %v2655_v3 = vld [vmem:[%s2772_s7 + $0xc0] ss:$8 sps:$4 sm:$0xff]  }
  0x22   : > { %964 = vmatpush1.bf16.msra.mxu0 %v2568_v7  ;;  %2527 = vmatpush1.bf16.msra.mxu1 %v2568_v7  ;;  %v2656_v4 = vld [vmem:[%s2772_s7 + $0x1c0] ss:$8 sps:$4 sm:$0xff]   ;;  %v2657_v5 = vld [vmem:[%s2772_s7 + $0xd4] ss:$8 sps:$4 sm:$0xff]   ;;  %v2661_v7 = vld [vmem:[%s2772_s7 + $0xd0] ss:$8 sps:$4 sm:$0xff]  }
  0x23   : > { %965 = vmatprep.subr.bf16.mxu0 %v2699_v1  ;;  %2512 = vmatprep.subr.bf16.mxu1 %v2699_v1  ;;  %v2659_v6 = vld [vmem:[%s2772_s7 + $0x1d4] ss:$8 sps:$4 sm:$0xff]   ;;  %v2662_v8 = vld [vmem:[%s2772_s7 + $0x1d0] ss:$8 sps:$4 sm:$0xff]  }
  0x26   : > { %966 = vmatpush1.bf16.msra.mxu0 %v2569_v9  ;;  %2528 = vmatpush1.bf16.msra.mxu1 %v2569_v9  ;;  %v2663_v9 = vld [vmem:[%s2772_s7 + $0xe4] ss:$8 sps:$4 sm:$0xff]  }
  0x27   : > { %967 = vmatprep.subr.bf16.mxu0 %v2699_v1  ;;  %2513 = vmatprep.subr.bf16.mxu1 %v2699_v1 }
  0x2a   : > { %968 = vmatpush1.bf16.msra.mxu0 %v2570_v10  ;;  %2529 = vmatpush1.bf16.msra.mxu1 %v2570_v10  ;;  %v2665_v10 = vld [vmem:[%s2772_s7 + $0x1e4] ss:$8 sps:$4 sm:$0xff]  }
  0x2b   : > { %969 = vmatprep.subr.bf16.mxu0 %v2699_v1  ;;  %2514 = vmatprep.subr.bf16.mxu1 %v2699_v1 }
  0x2e   : > { %970 = vmatpush2.bf16.msra.mxu0 %v2571_v11  ;;  %2530 = vmatpush2.bf16.msra.mxu1 %v2571_v11  ;;  %v2667_v11 = vld [vmem:[%s2772_s7 + $0xe0] ss:$8 sps:$4 sm:$0xff]  }
  0x2f   : > { %971 = vmatprep.subr.bf16.mxu0 %v2699_v1  ;;  %2515 = vmatprep.subr.bf16.mxu1 %v2699_v1 }
  0x32   : > { %972 = vmatpush2.bf16.msra.mxu0 %v2572_v12  ;;  %2531 = vmatpush2.bf16.msra.mxu1 %v2572_v12  ;;  %v2668_v12 = vld [vmem:[%s2772_s7 + $0x1e0] ss:$8 sps:$4 sm:$0xff]  }
  0x33   : > { %973 = vmatprep.subr.bf16.mxu0 %v2699_v1  ;;  %2516 = vmatprep.subr.bf16.mxu1 %v2699_v1 }
  0x36   : > { %974 = vmatpush2.bf16.msra.mxu0 %v2573_v13  ;;  %2532 = vmatpush2.bf16.msra.mxu1 %v2573_v13  ;;  %v2669_v13 = vld [vmem:[%s2772_s7 + $0xf4] ss:$8 sps:$4 sm:$0xff]  }
  0x37   : > { %975 = vmatprep.subr.bf16.mxu0 %v2699_v1  ;;  %2517 = vmatprep.subr.bf16.mxu1 %v2699_v1 }
  0x3a   : > { %976 = vmatpush2.bf16.msra.mxu0 %v2574_v14  ;;  %2533 = vmatpush2.bf16.msra.mxu1 %v2574_v14  ;;  %v2671_v14 = vld [vmem:[%s2772_s7 + $0x1f4] ss:$8 sps:$4 sm:$0xff]  }
  0x3b   : > { %977 = vmatprep.subr.bf16.mxu0 %v2699_v1  ;;  %2518 = vmatprep.subr.bf16.mxu1 %v2699_v1 }
  0x3e   : > { %978 = vmatpush2.bf16.msra.mxu0 %v2575_v15  ;;  %2534 = vmatpush2.bf16.msra.mxu1 %v2575_v15  ;;  %v2673_v15 = vld [vmem:[%s2772_s7 + $0xf0] ss:$8 sps:$4 sm:$0xff]  }
  0x3f   : > { %979 = vmatprep.subr.bf16.mxu0 %v2699_v1  ;;  %2519 = vmatprep.subr.bf16.mxu1 %v2699_v1 }
  0x42   : > { %980 = vmatpush2.bf16.msra.mxu0 %v2576_v16  ;;  %2535 = vmatpush2.bf16.msra.mxu1 %v2576_v16  ;;  %v2674_v16 = vld [vmem:[%s2772_s7 + $0x1f0] ss:$8 sps:$4 sm:$0xff]  }
  0x43   : > { %981 = vmatprep.subr.bf16.mxu0 %v2699_v1  ;;  %2520 = vmatprep.subr.bf16.mxu1 %v2699_v1 }
  0x46   : > { %982 = vmatpush2.bf16.msra.mxu0 %v2577_v17  ;;  %2536 = vmatpush2.bf16.msra.mxu1 %v2577_v17  ;;  %v2898_v17 = vld [vmem:[%s3082_s2] ss:$0 sm:$0xff] }
  0x47   : > { %983 = vmatprep.subr.bf16.mxu0 %v2699_v1  ;;  %2521 = vmatprep.subr.bf16.mxu1 %v2699_v1  ;;  %v2651_v1 = vld [vmem:[%s2772_s7 + $0xc4] ss:$8 sps:$4 sm:$0xff]   ;;  %s2101_s7 = sshll.u32 %s3090_s21, 2 }
  0x48   : > { %s2919_s15 = scalar_lea.vmem %s3084_s4, %s2101_s7 }
  0x4a   : > { %984 = vmatpush2.bf16.msra.mxu0 %v2578_v18  ;;  %2537 = vmatpush2.bf16.msra.mxu1 %v2578_v18 }
  0x4d   : > { %986 = vmatmul.mubr.bf16.vlgmr.msra.gmra.mxu0 %v2579_v19  ;;  %1114 = vmatmul.mubr.bf16.vlgmr.msra.gmra.mxu1 %v2582_v20 }
  0x4e   : > { %993 = vmatprep.mubr.bf16.mxu0 %v2585_v21  ;;  %1121 = vmatprep.mubr.bf16.mxu1 %v2587_v22  ;;  %v2904_v21 = vld [vmem:[%s3083_s3] ss:$0 sm:$0xff] }
  0x55   : > { %994 = vmatmul.mubr.bf16.gmra.mxu0 %v2589_v23  ;;  %1122 = vmatmul.mubr.bf16.gmra.mxu1 %v2590_v24 }
  0x56   : > { %1001 = vmatprep.mubr.bf16.mxu0 %v2591_v25  ;;  %1129 = vmatprep.mubr.bf16.mxu1 %v2593_v26 }
  0x5d   : > { %1002 = vmatmul.mubr.bf16.gmra.mxu0 %v2595_v27  ;;  %1130 = vmatmul.mubr.bf16.gmra.mxu1 %v2596_v28 }
  0x5e   : > { %1009 = vmatprep.mubr.bf16.mxu0 %v2597_v29  ;;  %1137 = vmatprep.mubr.bf16.mxu1 %v2599_v30 }
  0x65   : > { %1010 = vmatmul.mubr.bf16.gmra.mxu0 %v2601_v31  ;;  %1138 = vmatmul.mubr.bf16.gmra.mxu1 %v2602_v32 }
  0x66   : > { %1017 = vmatprep.mubr.bf16.mxu0 %v2603_v33  ;;  %1145 = vmatprep.mubr.bf16.mxu1 %v2605_v34 }
  0x6d   : > { %1018 = vmatmul.mubr.bf16.gmra.mxu0 %v2607_v35  ;;  %1146 = vmatmul.mubr.bf16.gmra.mxu1 %v2608_v36 }
  0x6e   : > { %1025 = vmatprep.mubr.bf16.mxu0 %v2609_v37  ;;  %1153 = vmatprep.mubr.bf16.mxu1 %v2611_v38 }
  0x75   : > { %1026 = vmatmul.mubr.bf16.gmra.mxu0 %v2613_v39  ;;  %1154 = vmatmul.mubr.bf16.gmra.mxu1 %v2614_v40 }
  0x76   : > { %1033 = vmatprep.mubr.bf16.mxu0 %v2615_v41  ;;  %1161 = vmatprep.mubr.bf16.mxu1 %v2617_v42 }
  0x7d   : > { %1034 = vmatmul.mubr.bf16.gmra.mxu0 %v2619_v43  ;;  %1162 = vmatmul.mubr.bf16.gmra.mxu1 %v2620_v44 }
  0x7e   : > { %1041 = vmatprep.mubr.bf16.mxu0 %v2621_v45  ;;  %1169 = vmatprep.mubr.bf16.mxu1 %v2623_v46 }
  0x85   : > { %1042 = vmatmul.mubr.bf16.gmra.mxu0 %v2625_v47  ;;  %1170 = vmatmul.mubr.bf16.gmra.mxu1 %v2626_v48 }
  0x86   : > { %1049 = vmatprep.mubr.bf16.mxu0 %v2627_v49  ;;  %1177 = vmatprep.mubr.bf16.mxu1 %v2629_v50 }
  0x8d   : > { %1050 = vmatmul.mubr.bf16.gmra.mxu0 %v2631_v51  ;;  %1178 = vmatmul.mubr.bf16.gmra.mxu1 %v2632_v52 }
  0x8e   : > { %1057 = vmatprep.mubr.bf16.mxu0 %v2633_v53  ;;  %1185 = vmatprep.mubr.bf16.mxu1 %v2635_v54 }
  0x95   : > { %1058 = vmatmul.mubr.bf16.gmra.mxu0 %v2637_v55  ;;  %1186 = vmatmul.mubr.bf16.gmra.mxu1 %v2638_v56 }
  0x96   : > { %1065 = vmatprep.mubr.bf16.mxu0 %v2639_v57  ;;  %1193 = vmatprep.mubr.bf16.mxu1 %v2641_v58 }
  0x9d   : > { %1066 = vmatmul.mubr.bf16.gmra.mxu0 %v2643_v59  ;;  %1194 = vmatmul.mubr.bf16.gmra.mxu1 %v2644_v60 }
  0x9e   : > { %1073 = vmatprep.mubr.bf16.mxu0 %v2645_v61  ;;  %1201 = vmatprep.mubr.bf16.mxu1 %v2647_v62 }
  0xa5   : > { %1074 = vmatmul.mubr.bf16.gmra.mxu0 %v2649_v63  ;;  %1202 = vmatmul.mubr.bf16.gmra.mxu1 %v2650_v0 }
  0xa6   : > { %1081 = vmatprep.mubr.bf16.mxu0 %v2651_v1  ;;  %1209 = vmatprep.mubr.bf16.mxu1 %v2653_v2 }
  0xad   : > { %1082 = vmatmul.mubr.bf16.gmra.mxu0 %v2655_v3  ;;  %1210 = vmatmul.mubr.bf16.gmra.mxu1 %v2656_v4 }
  0xae   : > { %1089 = vmatprep.mubr.bf16.mxu0 %v2657_v5  ;;  %1217 = vmatprep.mubr.bf16.mxu1 %v2659_v6 }
  0xb5   : > { %1090 = vmatmul.mubr.bf16.gmra.mxu0 %v2661_v7  ;;  %1218 = vmatmul.mubr.bf16.gmra.mxu1 %v2662_v8 }
  0xb6   : > { %1097 = vmatprep.mubr.bf16.mxu0 %v2663_v9  ;;  %1225 = vmatprep.mubr.bf16.mxu1 %v2665_v10 }
  0xbd   : > { %1098 = vmatmul.mubr.bf16.gmra.mxu0 %v2667_v11  ;;  %1226 = vmatmul.mubr.bf16.gmra.mxu1 %v2668_v12 }
  0xbe   : > { %1105 = vmatprep.mubr.bf16.mxu0 %v2669_v13  ;;  %1233 = vmatprep.mubr.bf16.mxu1 %v2671_v14 }
  0xc5   : > { %1106 = vmatmul.mubr.bf16.gmra.mxu0 %v2673_v15  ;;  %1234 = vmatmul.mubr.bf16.gmra.mxu1 %v2674_v16 }
 0x10d   : > { %v987_v18 = vpop.f32.mrf.mxu0  ;;  %v1115_v19 = vpop.f32.mrf.mxu1 }
 0x10e   : > { %v1444_v20 = vmul.f32 %v2898_v17, %v987_v18  ;;  %v1476_v22 = vmul.f32 %v2898_v17, %v1115_v19 }
 0x10f   : > { %v989_v23 = vpop.f32.mrf.mxu0  ;;  %v1117_v24 = vpop.f32.mrf.mxu1 }
 0x110   : > { %v1515_v25 = vadd.f32 %v2904_v21, %v1444_v20  ;;  %v1547_v26 = vadd.f32 %v2904_v21, %v1476_v22 }
 0x111   : > { %v990_v27 = vpop.f32.mrf.mxu0  ;;  %v1118_v28 = vpop.f32.mrf.mxu1 }
 0x112   : > { %v1445_v29 = vmul.f32 %v2898_v17, %v990_v27  ;;  %v1477_v30 = vmul.f32 %v2898_v17, %v1118_v28  ;;  %v1579_v35 = vmax.f32 %v1515_v25, 0.0  ;;  %v1611_v36 = vmax.f32 %v1547_v26, 0.0 }
 0x113   : > { %v992_v31 = vpop.f32.mrf.mxu0  ;;  %v1120_v32 = vpop.f32.mrf.mxu1 }
 0x114   : > { %v1516_v33 = vadd.f32 %v2904_v21, %v1445_v29  ;;  %v1548_v34 = vadd.f32 %v2904_v21, %v1477_v30 }
 0x115   : > { %v995_v37 = vpop.f32.mrf.mxu0  ;;  %v1123_v38 = vpop.f32.mrf.mxu1 }
 0x116   : > { %v1580_v39 = vmax.f32 %v1516_v33, 0.0  ;;  %v1612_v40 = vmax.f32 %v1548_v34, 0.0  ;;  %v1446_v41 = vmul.f32 %v2898_v17, %v995_v37  ;;  %v1478_v42 = vmul.f32 %v2898_v17, %v1123_v38 }
 0x117   : > { %v997_v43 = vpop.f32.mrf.mxu0  ;;  %v1125_v44 = vpop.f32.mrf.mxu1 }
 0x118   : > { %v2318_v45 = vpack.c.bf16 %v1580_v39, %v1579_v35  ;;  %v2398_v46 = vpack.c.bf16 %v1612_v40, %v1611_v36  ;;  %v1517_v47 = vadd.f32 %v2904_v21, %v1446_v41  ;;  %v1549_v48 = vadd.f32 %v2904_v21, %v1478_v42 }
 0x119   : > { %v998_v49 = vpop.f32.mrf.mxu0  ;;  %v1126_v50 = vpop.f32.mrf.mxu1 }
 0x11a   : > { %2319 = vst [vmem:[%s2919_s15] sm:$0xff] %v2318_v45   ;;  %2490 = vst [vmem:[%s2919_s15 + $0x80] sm:$0xff] %v2398_v46   ;;  %v1447_v51 = vmul.f32 %v2898_v17, %v998_v49  ;;  %v1479_v52 = vmul.f32 %v2898_v17, %v1126_v50  ;;  %v1581_v57 = vmax.f32 %v1517_v47, 0.0  ;;  %v1613_v58 = vmax.f32 %v1549_v48, 0.0 }
 0x11b   : > { %v1000_v53 = vpop.f32.mrf.mxu0  ;;  %v1128_v54 = vpop.f32.mrf.mxu1 }
 0x11c   : > { %v1518_v55 = vadd.f32 %v2904_v21, %v1447_v51  ;;  %v1550_v56 = vadd.f32 %v2904_v21, %v1479_v52 }
 0x11d   : > { %v1003_v59 = vpop.f32.mrf.mxu0  ;;  %v1131_v60 = vpop.f32.mrf.mxu1 }
 0x11e   : > { %v1582_v61 = vmax.f32 %v1518_v55, 0.0  ;;  %v1614_v62 = vmax.f32 %v1550_v56, 0.0  ;;  %v1448_v63 = vmul.f32 %v2898_v17, %v1003_v59  ;;  %v1480_v0 = vmul.f32 %v2898_v17, %v1131_v60 }
 0x11f   : > { %v1005_v1 = vpop.f32.mrf.mxu0  ;;  %v1133_v2 = vpop.f32.mrf.mxu1 }
 0x120   : > { %v2323_v3 = vpack.c.bf16 %v1582_v61, %v1581_v57  ;;  %v2403_v4 = vpack.c.bf16 %v1614_v62, %v1613_v58  ;;  %v1519_v5 = vadd.f32 %v2904_v21, %v1448_v63  ;;  %v1551_v6 = vadd.f32 %v2904_v21, %v1480_v0 }
 0x121   : > { %v1006_v7 = vpop.f32.mrf.mxu0  ;;  %v1134_v8 = vpop.f32.mrf.mxu1 }
 0x122   : > { %2475 = vst [vmem:[%s2919_s15 + $0x8] sm:$0xff] %v2323_v3   ;;  %2491 = vst [vmem:[%s2919_s15 + $0x88] sm:$0xff] %v2403_v4   ;;  %v1449_v9 = vmul.f32 %v2898_v17, %v1006_v7  ;;  %v1481_v10 = vmul.f32 %v2898_v17, %v1134_v8  ;;  %v1583_v15 = vmax.f32 %v1519_v5, 0.0  ;;  %v1615_v16 = vmax.f32 %v1551_v6, 0.0 }
 0x123   : > { %v1008_v11 = vpop.f32.mrf.mxu0  ;;  %v1136_v12 = vpop.f32.mrf.mxu1 }
 0x124   : > { %v1520_v13 = vadd.f32 %v2904_v21, %v1449_v9  ;;  %v1552_v14 = vadd.f32 %v2904_v21, %v1481_v10 }
 0x125   : > { %v1011_v18 = vpop.f32.mrf.mxu0  ;;  %v1139_v19 = vpop.f32.mrf.mxu1 }
 0x126   : > { %v1584_v20 = vmax.f32 %v1520_v13, 0.0  ;;  %v1616_v22 = vmax.f32 %v1552_v14, 0.0  ;;  %v1450_v23 = vmul.f32 %v2898_v17, %v1011_v18  ;;  %v1482_v24 = vmul.f32 %v2898_v17, %v1139_v19 }
 0x127   : > { %v1013_v25 = vpop.f32.mrf.mxu0  ;;  %v1141_v26 = vpop.f32.mrf.mxu1 }
 0x128   : > { %v2328_v27 = vpack.c.bf16 %v1584_v20, %v1583_v15  ;;  %v2408_v28 = vpack.c.bf16 %v1616_v22, %v1615_v16  ;;  %v1521_v29 = vadd.f32 %v2904_v21, %v1450_v23  ;;  %v1553_v30 = vadd.f32 %v2904_v21, %v1482_v24 }
 0x129   : > { %v1014_v31 = vpop.f32.mrf.mxu0  ;;  %v1142_v32 = vpop.f32.mrf.mxu1 }
 0x12a   : > { %2476 = vst [vmem:[%s2919_s15 + $0x10] sm:$0xff] %v2328_v27   ;;  %2492 = vst [vmem:[%s2919_s15 + $0x90] sm:$0xff] %v2408_v28   ;;  %v1451_v33 = vmul.f32 %v2898_v17, %v1014_v31  ;;  %v1483_v34 = vmul.f32 %v2898_v17, %v1142_v32  ;;  %v1585_v39 = vmax.f32 %v1521_v29, 0.0  ;;  %v1617_v40 = vmax.f32 %v1553_v30, 0.0 }
 0x12b   : > { %v1016_v35 = vpop.f32.mrf.mxu0  ;;  %v1144_v36 = vpop.f32.mrf.mxu1 }
 0x12c   : > { %v1522_v37 = vadd.f32 %v2904_v21, %v1451_v33  ;;  %v1554_v38 = vadd.f32 %v2904_v21, %v1483_v34 }
 0x12d   : > { %v1019_v41 = vpop.f32.mrf.mxu0  ;;  %v1147_v42 = vpop.f32.mrf.mxu1 }
 0x12e   : > { %v1586_v43 = vmax.f32 %v1522_v37, 0.0  ;;  %v1618_v44 = vmax.f32 %v1554_v38, 0.0  ;;  %v1452_v45 = vmul.f32 %v2898_v17, %v1019_v41  ;;  %v1484_v46 = vmul.f32 %v2898_v17, %v1147_v42 }
 0x12f   : > { %v1021_v47 = vpop.f32.mrf.mxu0  ;;  %v1149_v48 = vpop.f32.mrf.mxu1 }
 0x130   : > { %v2333_v49 = vpack.c.bf16 %v1586_v43, %v1585_v39  ;;  %v2413_v50 = vpack.c.bf16 %v1618_v44, %v1617_v40  ;;  %v1523_v51 = vadd.f32 %v2904_v21, %v1452_v45  ;;  %v1555_v52 = vadd.f32 %v2904_v21, %v1484_v46 }
 0x131   : > { %v1022_v53 = vpop.f32.mrf.mxu0  ;;  %v1150_v54 = vpop.f32.mrf.mxu1 }
 0x132   : > { %2477 = vst [vmem:[%s2919_s15 + $0x18] sm:$0xff] %v2333_v49   ;;  %2493 = vst [vmem:[%s2919_s15 + $0x98] sm:$0xff] %v2413_v50   ;;  %v1453_v55 = vmul.f32 %v2898_v17, %v1022_v53  ;;  %v1485_v56 = vmul.f32 %v2898_v17, %v1150_v54  ;;  %v1587_v61 = vmax.f32 %v1523_v51, 0.0  ;;  %v1619_v62 = vmax.f32 %v1555_v52, 0.0 }
 0x133   : > { %v1024_v57 = vpop.f32.mrf.mxu0  ;;  %v1152_v58 = vpop.f32.mrf.mxu1 }
 0x134   : > { %v1524_v59 = vadd.f32 %v2904_v21, %v1453_v55  ;;  %v1556_v60 = vadd.f32 %v2904_v21, %v1485_v56 }
 0x135   : > { %v1027_v63 = vpop.f32.mrf.mxu0  ;;  %v1155_v0 = vpop.f32.mrf.mxu1 }
 0x136   : > { %v1588_v1 = vmax.f32 %v1524_v59, 0.0  ;;  %v1620_v2 = vmax.f32 %v1556_v60, 0.0  ;;  %v1454_v3 = vmul.f32 %v2898_v17, %v1027_v63  ;;  %v1486_v4 = vmul.f32 %v2898_v17, %v1155_v0 }
 0x137   : > { %v1029_v5 = vpop.f32.mrf.mxu0  ;;  %v1157_v6 = vpop.f32.mrf.mxu1 }
 0x138   : > { %v2338_v7 = vpack.c.bf16 %v1588_v1, %v1587_v61  ;;  %v2418_v8 = vpack.c.bf16 %v1620_v2, %v1619_v62  ;;  %v1525_v9 = vadd.f32 %v2904_v21, %v1454_v3  ;;  %v1557_v10 = vadd.f32 %v2904_v21, %v1486_v4 }
 0x139   : > { %v1030_v11 = vpop.f32.mrf.mxu0  ;;  %v1158_v12 = vpop.f32.mrf.mxu1 }
 0x13a   : > { %2478 = vst [vmem:[%s2919_s15 + $0x20] sm:$0xff] %v2338_v7   ;;  %2494 = vst [vmem:[%s2919_s15 + $0xa0] sm:$0xff] %v2418_v8   ;;  %v1455_v13 = vmul.f32 %v2898_v17, %v1030_v11  ;;  %v1487_v14 = vmul.f32 %v2898_v17, %v1158_v12  ;;  %v1589_v20 = vmax.f32 %v1525_v9, 0.0  ;;  %v1621_v22 = vmax.f32 %v1557_v10, 0.0 }
 0x13b   : > { %v1032_v15 = vpop.f32.mrf.mxu0  ;;  %v1160_v16 = vpop.f32.mrf.mxu1 }
 0x13c   : > { %v1526_v18 = vadd.f32 %v2904_v21, %v1455_v13  ;;  %v1558_v19 = vadd.f32 %v2904_v21, %v1487_v14 }
 0x13d   : > { %v1035_v23 = vpop.f32.mrf.mxu0  ;;  %v1163_v24 = vpop.f32.mrf.mxu1 }
 0x13e   : > { %v1590_v25 = vmax.f32 %v1526_v18, 0.0  ;;  %v1622_v26 = vmax.f32 %v1558_v19, 0.0  ;;  %v1456_v27 = vmul.f32 %v2898_v17, %v1035_v23  ;;  %v1488_v28 = vmul.f32 %v2898_v17, %v1163_v24 }
 0x13f   : > { %v1037_v29 = vpop.f32.mrf.mxu0  ;;  %v1165_v30 = vpop.f32.mrf.mxu1 }
 0x140   : > { %v2343_v31 = vpack.c.bf16 %v1590_v25, %v1589_v20  ;;  %v2423_v32 = vpack.c.bf16 %v1622_v26, %v1621_v22  ;;  %v1527_v33 = vadd.f32 %v2904_v21, %v1456_v27  ;;  %v1559_v34 = vadd.f32 %v2904_v21, %v1488_v28 }
 0x141   : > { %v1038_v35 = vpop.f32.mrf.mxu0  ;;  %v1166_v36 = vpop.f32.mrf.mxu1 }
 0x142   : > { %2479 = vst [vmem:[%s2919_s15 + $0x28] sm:$0xff] %v2343_v31   ;;  %2495 = vst [vmem:[%s2919_s15 + $0xa8] sm:$0xff] %v2423_v32   ;;  %v1457_v37 = vmul.f32 %v2898_v17, %v1038_v35  ;;  %v1489_v38 = vmul.f32 %v2898_v17, %v1166_v36  ;;  %v1591_v43 = vmax.f32 %v1527_v33, 0.0  ;;  %v1623_v44 = vmax.f32 %v1559_v34, 0.0 }
 0x143   : > { %v1040_v39 = vpop.f32.mrf.mxu0  ;;  %v1168_v40 = vpop.f32.mrf.mxu1 }
 0x144   : > { %v1528_v41 = vadd.f32 %v2904_v21, %v1457_v37  ;;  %v1560_v42 = vadd.f32 %v2904_v21, %v1489_v38 }
 0x145   : > { %v1043_v45 = vpop.f32.mrf.mxu0  ;;  %v1171_v46 = vpop.f32.mrf.mxu1 }
 0x146   : > { %v1592_v47 = vmax.f32 %v1528_v41, 0.0  ;;  %v1624_v48 = vmax.f32 %v1560_v42, 0.0  ;;  %v1458_v49 = vmul.f32 %v2898_v17, %v1043_v45  ;;  %v1490_v50 = vmul.f32 %v2898_v17, %v1171_v46 }
 0x147   : > { %v1045_v51 = vpop.f32.mrf.mxu0  ;;  %v1173_v52 = vpop.f32.mrf.mxu1 }
 0x148   : > { %v2348_v53 = vpack.c.bf16 %v1592_v47, %v1591_v43  ;;  %v2428_v54 = vpack.c.bf16 %v1624_v48, %v1623_v44  ;;  %v1529_v55 = vadd.f32 %v2904_v21, %v1458_v49  ;;  %v1561_v56 = vadd.f32 %v2904_v21, %v1490_v50 }
 0x149   : > { %v1046_v57 = vpop.f32.mrf.mxu0  ;;  %v1174_v58 = vpop.f32.mrf.mxu1 }
 0x14a   : > { %2480 = vst [vmem:[%s2919_s15 + $0x30] sm:$0xff] %v2348_v53   ;;  %2496 = vst [vmem:[%s2919_s15 + $0xb0] sm:$0xff] %v2428_v54   ;;  %v1459_v59 = vmul.f32 %v2898_v17, %v1046_v57  ;;  %v1491_v60 = vmul.f32 %v2898_v17, %v1174_v58  ;;  %v1593_v1 = vmax.f32 %v1529_v55, 0.0  ;;  %v1625_v2 = vmax.f32 %v1561_v56, 0.0 }
 0x14b   : > { %v1048_v61 = vpop.f32.mrf.mxu0  ;;  %v1176_v62 = vpop.f32.mrf.mxu1 }
 0x14c   : > { %v1530_v63 = vadd.f32 %v2904_v21, %v1459_v59  ;;  %v1562_v0 = vadd.f32 %v2904_v21, %v1491_v60 }
 0x14d   : > { %v1051_v3 = vpop.f32.mrf.mxu0  ;;  %v1179_v4 = vpop.f32.mrf.mxu1 }
 0x14e   : > { %v1594_v5 = vmax.f32 %v1530_v63, 0.0  ;;  %v1626_v6 = vmax.f32 %v1562_v0, 0.0  ;;  %v1460_v7 = vmul.f32 %v2898_v17, %v1051_v3  ;;  %v1492_v8 = vmul.f32 %v2898_v17, %v1179_v4 }
 0x14f   : > { %v1053_v9 = vpop.f32.mrf.mxu0  ;;  %v1181_v10 = vpop.f32.mrf.mxu1 }
 0x150   : > { %v2353_v11 = vpack.c.bf16 %v1594_v5, %v1593_v1  ;;  %v2433_v12 = vpack.c.bf16 %v1626_v6, %v1625_v2  ;;  %v1531_v13 = vadd.f32 %v2904_v21, %v1460_v7  ;;  %v1563_v14 = vadd.f32 %v2904_v21, %v1492_v8 }
 0x151   : > { %v1054_v15 = vpop.f32.mrf.mxu0  ;;  %v1182_v16 = vpop.f32.mrf.mxu1 }
 0x152   : > { %2481 = vst [vmem:[%s2919_s15 + $0x38] sm:$0xff] %v2353_v11   ;;  %2497 = vst [vmem:[%s2919_s15 + $0xb8] sm:$0xff] %v2433_v12   ;;  %v1461_v18 = vmul.f32 %v2898_v17, %v1054_v15  ;;  %v1493_v19 = vmul.f32 %v2898_v17, %v1182_v16  ;;  %v1595_v25 = vmax.f32 %v1531_v13, 0.0  ;;  %v1627_v26 = vmax.f32 %v1563_v14, 0.0 }
 0x153   : > { %v1056_v20 = vpop.f32.mrf.mxu0  ;;  %v1184_v22 = vpop.f32.mrf.mxu1 }
 0x154   : > { %v1532_v23 = vadd.f32 %v2904_v21, %v1461_v18  ;;  %v1564_v24 = vadd.f32 %v2904_v21, %v1493_v19 }
 0x155   : > { %v1059_v27 = vpop.f32.mrf.mxu0  ;;  %v1187_v28 = vpop.f32.mrf.mxu1 }
 0x156   : > { %v1596_v29 = vmax.f32 %v1532_v23, 0.0  ;;  %v1628_v30 = vmax.f32 %v1564_v24, 0.0  ;;  %v1462_v31 = vmul.f32 %v2898_v17, %v1059_v27  ;;  %v1494_v32 = vmul.f32 %v2898_v17, %v1187_v28 }
 0x157   : > { %v1061_v33 = vpop.f32.mrf.mxu0  ;;  %v1189_v34 = vpop.f32.mrf.mxu1 }
 0x158   : > { %v2358_v35 = vpack.c.bf16 %v1596_v29, %v1595_v25  ;;  %v2438_v36 = vpack.c.bf16 %v1628_v30, %v1627_v26  ;;  %v1533_v37 = vadd.f32 %v2904_v21, %v1462_v31  ;;  %v1565_v38 = vadd.f32 %v2904_v21, %v1494_v32 }
 0x159   : > { %v1062_v39 = vpop.f32.mrf.mxu0  ;;  %v1190_v40 = vpop.f32.mrf.mxu1 }
 0x15a   : > { %2482 = vst [vmem:[%s2919_s15 + $0x40] sm:$0xff] %v2358_v35   ;;  %2498 = vst [vmem:[%s2919_s15 + $0xc0] sm:$0xff] %v2438_v36   ;;  %v1463_v41 = vmul.f32 %v2898_v17, %v1062_v39  ;;  %v1495_v42 = vmul.f32 %v2898_v17, %v1190_v40  ;;  %v1597_v47 = vmax.f32 %v1533_v37, 0.0  ;;  %v1629_v48 = vmax.f32 %v1565_v38, 0.0 }
 0x15b   : > { %v1064_v43 = vpop.f32.mrf.mxu0  ;;  %v1192_v44 = vpop.f32.mrf.mxu1 }
 0x15c   : > { %v1534_v45 = vadd.f32 %v2904_v21, %v1463_v41  ;;  %v1566_v46 = vadd.f32 %v2904_v21, %v1495_v42 }
 0x15d   : > { %v1067_v49 = vpop.f32.mrf.mxu0  ;;  %v1195_v50 = vpop.f32.mrf.mxu1 }
 0x15e   : > { %v1598_v51 = vmax.f32 %v1534_v45, 0.0  ;;  %v1630_v52 = vmax.f32 %v1566_v46, 0.0  ;;  %v1464_v53 = vmul.f32 %v2898_v17, %v1067_v49  ;;  %v1496_v54 = vmul.f32 %v2898_v17, %v1195_v50 }
 0x15f   : > { %v1069_v55 = vpop.f32.mrf.mxu0  ;;  %v1197_v56 = vpop.f32.mrf.mxu1 }
 0x160   : > { %v2363_v57 = vpack.c.bf16 %v1598_v51, %v1597_v47  ;;  %v2443_v58 = vpack.c.bf16 %v1630_v52, %v1629_v48  ;;  %v1535_v59 = vadd.f32 %v2904_v21, %v1464_v53  ;;  %v1567_v60 = vadd.f32 %v2904_v21, %v1496_v54 }
 0x161   : > { %v1070_v61 = vpop.f32.mrf.mxu0  ;;  %v1198_v62 = vpop.f32.mrf.mxu1 }
 0x162   : > { %2483 = vst [vmem:[%s2919_s15 + $0x48] sm:$0xff] %v2363_v57   ;;  %2499 = vst [vmem:[%s2919_s15 + $0xc8] sm:$0xff] %v2443_v58   ;;  %v1465_v63 = vmul.f32 %v2898_v17, %v1070_v61  ;;  %v1497_v0 = vmul.f32 %v2898_v17, %v1198_v62  ;;  %v1599_v5 = vmax.f32 %v1535_v59, 0.0  ;;  %v1631_v6 = vmax.f32 %v1567_v60, 0.0 }
 0x163   : > { %v1072_v1 = vpop.f32.mrf.mxu0  ;;  %v1200_v2 = vpop.f32.mrf.mxu1 }
 0x164   : > { %v1536_v3 = vadd.f32 %v2904_v21, %v1465_v63  ;;  %v1568_v4 = vadd.f32 %v2904_v21, %v1497_v0 }
 0x165   : > { %v1075_v7 = vpop.f32.mrf.mxu0  ;;  %v1203_v8 = vpop.f32.mrf.mxu1 }
 0x166   : > { %v1600_v9 = vmax.f32 %v1536_v3, 0.0  ;;  %v1632_v10 = vmax.f32 %v1568_v4, 0.0  ;;  %v1466_v11 = vmul.f32 %v2898_v17, %v1075_v7  ;;  %v1498_v12 = vmul.f32 %v2898_v17, %v1203_v8 }
 0x167   : > { %v1077_v13 = vpop.f32.mrf.mxu0  ;;  %v1205_v14 = vpop.f32.mrf.mxu1 }
 0x168   : > { %v2368_v15 = vpack.c.bf16 %v1600_v9, %v1599_v5  ;;  %v2448_v16 = vpack.c.bf16 %v1632_v10, %v1631_v6  ;;  %v1537_v18 = vadd.f32 %v2904_v21, %v1466_v11  ;;  %v1569_v19 = vadd.f32 %v2904_v21, %v1498_v12 }
 0x169   : > { %v1078_v20 = vpop.f32.mrf.mxu0  ;;  %v1206_v22 = vpop.f32.mrf.mxu1 }
 0x16a   : > { %2484 = vst [vmem:[%s2919_s15 + $0x50] sm:$0xff] %v2368_v15   ;;  %2500 = vst [vmem:[%s2919_s15 + $0xd0] sm:$0xff] %v2448_v16   ;;  %v1467_v23 = vmul.f32 %v2898_v17, %v1078_v20  ;;  %v1499_v24 = vmul.f32 %v2898_v17, %v1206_v22  ;;  %v1601_v29 = vmax.f32 %v1537_v18, 0.0  ;;  %v1633_v30 = vmax.f32 %v1569_v19, 0.0 }
 0x16b   : > { %v1080_v25 = vpop.f32.mrf.mxu0  ;;  %v1208_v26 = vpop.f32.mrf.mxu1 }
 0x16c   : > { %v1538_v27 = vadd.f32 %v2904_v21, %v1467_v23  ;;  %v1570_v28 = vadd.f32 %v2904_v21, %v1499_v24 }
 0x16d   : > { %v1083_v31 = vpop.f32.mrf.mxu0  ;;  %v1211_v32 = vpop.f32.mrf.mxu1 }
 0x16e   : > { %v1602_v33 = vmax.f32 %v1538_v27, 0.0  ;;  %v1634_v34 = vmax.f32 %v1570_v28, 0.0  ;;  %v1468_v35 = vmul.f32 %v2898_v17, %v1083_v31  ;;  %v1500_v36 = vmul.f32 %v2898_v17, %v1211_v32 }
 0x16f   : > { %v1085_v37 = vpop.f32.mrf.mxu0  ;;  %v1213_v38 = vpop.f32.mrf.mxu1 }
 0x170   : > { %v2373_v39 = vpack.c.bf16 %v1602_v33, %v1601_v29  ;;  %v2453_v40 = vpack.c.bf16 %v1634_v34, %v1633_v30  ;;  %v1539_v41 = vadd.f32 %v2904_v21, %v1468_v35  ;;  %v1571_v42 = vadd.f32 %v2904_v21, %v1500_v36 }
 0x171   : > { %v1086_v43 = vpop.f32.mrf.mxu0  ;;  %v1214_v44 = vpop.f32.mrf.mxu1 }
 0x172   : > { %2485 = vst [vmem:[%s2919_s15 + $0x58] sm:$0xff] %v2373_v39   ;;  %2501 = vst [vmem:[%s2919_s15 + $0xd8] sm:$0xff] %v2453_v40   ;;  %v1469_v45 = vmul.f32 %v2898_v17, %v1086_v43  ;;  %v1501_v46 = vmul.f32 %v2898_v17, %v1214_v44  ;;  %v1603_v51 = vmax.f32 %v1539_v41, 0.0  ;;  %v1635_v52 = vmax.f32 %v1571_v42, 0.0 }
 0x173   : > { %v1088_v47 = vpop.f32.mrf.mxu0  ;;  %v1216_v48 = vpop.f32.mrf.mxu1 }
 0x174   : > { %v1540_v49 = vadd.f32 %v2904_v21, %v1469_v45  ;;  %v1572_v50 = vadd.f32 %v2904_v21, %v1501_v46 }
 0x175   : > { %v1091_v53 = vpop.f32.mrf.mxu0  ;;  %v1219_v54 = vpop.f32.mrf.mxu1 }
 0x176   : > { %v1604_v55 = vmax.f32 %v1540_v49, 0.0  ;;  %v1636_v56 = vmax.f32 %v1572_v50, 0.0  ;;  %v1470_v57 = vmul.f32 %v2898_v17, %v1091_v53  ;;  %v1502_v58 = vmul.f32 %v2898_v17, %v1219_v54 }
 0x177   : > { %v1093_v59 = vpop.f32.mrf.mxu0  ;;  %v1221_v60 = vpop.f32.mrf.mxu1 }
 0x178   : > { %v2378_v61 = vpack.c.bf16 %v1604_v55, %v1603_v51  ;;  %v2458_v62 = vpack.c.bf16 %v1636_v56, %v1635_v52  ;;  %v1541_v63 = vadd.f32 %v2904_v21, %v1470_v57  ;;  %v1573_v0 = vadd.f32 %v2904_v21, %v1502_v58 }
 0x179   : > { %v1094_v1 = vpop.f32.mrf.mxu0  ;;  %v1222_v2 = vpop.f32.mrf.mxu1 }
 0x17a   : > { %2486 = vst [vmem:[%s2919_s15 + $0x60] sm:$0xff] %v2378_v61   ;;  %2502 = vst [vmem:[%s2919_s15 + $0xe0] sm:$0xff] %v2458_v62   ;;  %v1471_v3 = vmul.f32 %v2898_v17, %v1094_v1  ;;  %v1503_v4 = vmul.f32 %v2898_v17, %v1222_v2  ;;  %v1605_v9 = vmax.f32 %v1541_v63, 0.0  ;;  %v1637_v10 = vmax.f32 %v1573_v0, 0.0 }
 0x17b   : > { %v1096_v5 = vpop.f32.mrf.mxu0  ;;  %v1224_v6 = vpop.f32.mrf.mxu1 }
 0x17c   : > { %v1542_v7 = vadd.f32 %v2904_v21, %v1471_v3  ;;  %v1574_v8 = vadd.f32 %v2904_v21, %v1503_v4 }
 0x17d   : > { %v1099_v11 = vpop.f32.mrf.mxu0  ;;  %v1227_v12 = vpop.f32.mrf.mxu1 }
 0x17e   : > { %v1606_v13 = vmax.f32 %v1542_v7, 0.0  ;;  %v1638_v14 = vmax.f32 %v1574_v8, 0.0  ;;  %v1472_v15 = vmul.f32 %v2898_v17, %v1099_v11  ;;  %v1504_v16 = vmul.f32 %v2898_v17, %v1227_v12 }
 0x17f   : > { %v1101_v18 = vpop.f32.mrf.mxu0  ;;  %v1229_v19 = vpop.f32.mrf.mxu1 }
 0x180   : > { %v2383_v20 = vpack.c.bf16 %v1606_v13, %v1605_v9  ;;  %v2463_v22 = vpack.c.bf16 %v1638_v14, %v1637_v10  ;;  %v1543_v23 = vadd.f32 %v2904_v21, %v1472_v15  ;;  %v1575_v24 = vadd.f32 %v2904_v21, %v1504_v16 }
 0x181   : > { %v1102_v25 = vpop.f32.mrf.mxu0  ;;  %v1230_v26 = vpop.f32.mrf.mxu1 }
 0x182   : > { %2487 = vst [vmem:[%s2919_s15 + $0x68] sm:$0xff] %v2383_v20   ;;  %2503 = vst [vmem:[%s2919_s15 + $0xe8] sm:$0xff] %v2463_v22   ;;  %v1473_v27 = vmul.f32 %v2898_v17, %v1102_v25  ;;  %v1505_v28 = vmul.f32 %v2898_v17, %v1230_v26  ;;  %v1607_v33 = vmax.f32 %v1543_v23, 0.0  ;;  %v1639_v34 = vmax.f32 %v1575_v24, 0.0 }
 0x183   : > { %v1104_v29 = vpop.f32.mrf.mxu0  ;;  %v1232_v30 = vpop.f32.mrf.mxu1 }
 0x184   : > { %v1544_v31 = vadd.f32 %v2904_v21, %v1473_v27  ;;  %v1576_v32 = vadd.f32 %v2904_v21, %v1505_v28 }
 0x185   : > { %v1107_v35 = vpop.f32.mrf.mxu0  ;;  %v1235_v36 = vpop.f32.mrf.mxu1 }
 0x186   : > { %v1608_v37 = vmax.f32 %v1544_v31, 0.0  ;;  %v1640_v38 = vmax.f32 %v1576_v32, 0.0  ;;  %v1474_v39 = vmul.f32 %v2898_v17, %v1107_v35  ;;  %v1506_v40 = vmul.f32 %v2898_v17, %v1235_v36 }
 0x187   : > { %v1109_v41 = vpop.f32.mrf.mxu0  ;;  %v1237_v42 = vpop.f32.mrf.mxu1 }
 0x188   : > { %v2388_v43 = vpack.c.bf16 %v1608_v37, %v1607_v33  ;;  %v2468_v44 = vpack.c.bf16 %v1640_v38, %v1639_v34  ;;  %v1545_v47 = vadd.f32 %v2904_v21, %v1474_v39  ;;  %v1577_v48 = vadd.f32 %v2904_v21, %v1506_v40 }
 0x189   : > { %v1110_v45 = vpop.f32.mrf.mxu0  ;;  %v1238_v46 = vpop.f32.mrf.mxu1 }
 0x18a   : > { %2488 = vst [vmem:[%s2919_s15 + $0x70] sm:$0xff] %v2388_v43   ;;  %2504 = vst [vmem:[%s2919_s15 + $0xf0] sm:$0xff] %v2468_v44   ;;  %v1475_v49 = vmul.f32 %v2898_v17, %v1110_v45  ;;  %v1507_v50 = vmul.f32 %v2898_v17, %v1238_v46  ;;  %v1609_v55 = vmax.f32 %v1545_v47, 0.0  ;;  %v1641_v56 = vmax.f32 %v1577_v48, 0.0 }
 0x18b   : > { %v1112_v51 = vpop.f32.mrf.mxu0  ;;  %v1240_v52 = vpop.f32.mrf.mxu1 }
 0x18c   : > { %v1546_v53 = vadd.f32 %v2904_v21, %v1475_v49  ;;  %v1578_v54 = vadd.f32 %v2904_v21, %v1507_v50 }
 0x18e   : > { %v1610_v57 = vmax.f32 %v1546_v53, 0.0  ;;  %v1642_v58 = vmax.f32 %v1578_v54, 0.0 }
 0x190   : > { %v2393_v59 = vpack.c.bf16 %v1610_v57, %v1609_v55  ;;  %v2473_v60 = vpack.c.bf16 %v1642_v58, %v1641_v56 }
 0x192   : > { %2489 = vst [vmem:[%s2919_s15 + $0x78] sm:$0xff] %v2393_v59   ;;  %2505 = vst [vmem:[%s2919_s15 + $0xf8] sm:$0xff] %v2473_v60  }
 0x193 PF: > { %s14_s17 = sadd.s32 1, %s2697_s17   ;;  %s3085_s15 = smov %s2693_s16 }
 0x194   : > { %p11_p5 = scmp.ge.s32.totalorder %s14_s17, 6   ;;  %s3086_s16 = smov %s3088_s18 }
 0x196   :  { %13 = sbr.rel (!%p11_p5) target bundleno = 2 (0x2), region = 83 }

</bundles_post_ra>
